<compile_context>
chip_gen: v7x
topology: tpu7x:2x2x1
jax: 0.10.0
libtpu: 0.0.40
codegen_flags: <defaults>
</compile_context>

<pallas_src>
import jax
import jax.numpy as jnp
from jax.experimental import pallas as pl
from jax.experimental.pallas import tpu as pltpu


def _round_up(x, m):
    return ((x + m - 1) // m) * m


def _pad_rows_to(arr, rows):
    pad = rows - arr.shape[0]
    if pad == 0:
        return arr
    return jnp.pad(arr, ((0, pad), (0, 0)))


def _ast_encoder_kernel(t_idx_ref, a_idx_ref, d_idx_ref,
                        type_tab_ref, attr_tab_ref, depth_tab_ref,
                        w1_ref, b1_ref, w2_ref, b2_ref, o_ref):
    # t/a/d_idx_ref: [TN, 1] int32 row indices
    # *_tab_ref:     [rows, E] f32 embedding tables (rows padded to mult of 8)
    # w1_ref: [3E, 2E], b1_ref: [1, 2E], w2_ref: [2E, E], b2_ref: [1, E]
    tn = o_ref.shape[0]
    E = o_ref.shape[1]
    hi = jax.lax.Precision.HIGHEST

    def gather(tab_ref, idx):
        # One-hot MXU gather: exact row select (1.0 * row), no dynamic-gather
        # lowering and no HBM round-trip of an [N, E] intermediate.
        rows = tab_ref.shape[0]
        iota = jax.lax.broadcasted_iota(jnp.int32, (tn, rows), 1)
        onehot = (idx == iota).astype(jnp.float32)            # [TN, rows]
        return jnp.dot(onehot, tab_ref[...],
                       preferred_element_type=jnp.float32, precision=hi)

    t_emb = gather(type_tab_ref, t_idx_ref[...])              # [TN, E]
    a_emb = gather(attr_tab_ref, a_idx_ref[...])              # [TN, E]
    d_emb = gather(depth_tab_ref, d_idx_ref[...])             # [TN, E]

    # Linear(3E -> 2E): split w1 by rows instead of concatenating activations.
    h = (jnp.dot(t_emb, w1_ref[0:E, :],
                 preferred_element_type=jnp.float32, precision=hi)
         + jnp.dot(a_emb, w1_ref[E:2 * E, :],
                   preferred_element_type=jnp.float32, precision=hi)
         + jnp.dot(d_emb, w1_ref[2 * E:3 * E, :],
                   preferred_element_type=jnp.float32, precision=hi)
         + b1_ref[...])
    h = jnp.maximum(h, 0.0)                                   # ReLU
    y = jnp.dot(h, w2_ref[...],
                preferred_element_type=jnp.float32, precision=hi) + b2_ref[...]
    o_ref[...] = y.astype(o_ref.dtype)


def ast_node_encoder_forward(x, depth, params, max_depth, *, tn_max=1024):
    """x: int32 [N, 2]; depth: int32 [N]; returns float32 [N, emb_dim]."""
    type_tab = params["type_emb"]      # [num_nodetypes,      E]
    attr_tab = params["attr_emb"]      # [num_nodeattributes, E]
    depth_tab = params["depth_emb"]    # [max_depth + 1,      E]
    w1, b1 = params["w1"], params["b1"]  # [3E, 2E], [1, 2E]
    w2, b2 = params["w2"], params["b2"]  # [2E,  E], [1,  E]

    N = x.shape[0]
    E = type_tab.shape[1]

    # depth[depth > max_depth] = max_depth   (upper clamp only, as in PyTorch)
    depth = jnp.where(depth > max_depth, max_depth, depth).astype(jnp.int32)

    # Row tiling: TN rows per grid step (multiple of 8); pad N to whole tiles
    # so every block is full (no boundary masking), then slice the result.
    tn = min(tn_max, _round_up(N, 8))
    n_pad = _round_up(N, tn)

    def idx_col(v):
        return _pad_rows_to(v.astype(jnp.int32).reshape(N, 1), n_pad)

    t_idx = idx_col(x[:, 0])
    a_idx = idx_col(x[:, 1])
    d_idx = idx_col(depth)

    # Pad tables to a multiple of 8 rows (sublane aligned); the zero rows are
    # never selected by a valid index.
    type_tab_p = _pad_rows_to(type_tab, _round_up(type_tab.shape[0], 8))
    attr_tab_p = _pad_rows_to(attr_tab, _round_up(attr_tab.shape[0], 8))
    depth_tab_p = _pad_rows_to(depth_tab, _round_up(depth_tab.shape[0], 8))

    grid = (n_pad // tn,)

    tab_rows = type_tab_p.shape[0] + attr_tab_p.shape[0] + depth_tab_p.shape[0]
    flops = 2 * n_pad * (tab_rows * E + 3 * E * 2 * E + 2 * E * E)
    bytes_accessed = 4 * (3 * n_pad
                          + type_tab_p.size + attr_tab_p.size + depth_tab_p.size
                          + w1.size + b1.size + w2.size + b2.size
                          + n_pad * E)

    def idx_spec():
        return pl.BlockSpec((tn, 1), lambda i: (i, 0))

    def whole(a):
        return pl.BlockSpec(a.shape, lambda i: (0, 0))

    out = pl.pallas_call(
        _ast_encoder_kernel,
        out_shape=jax.ShapeDtypeStruct((n_pad, E), jnp.float32),
        grid=grid,
        in_specs=[
            idx_spec(), idx_spec(), idx_spec(),
            whole(type_tab_p), whole(attr_tab_p), whole(depth_tab_p),
            whole(w1), whole(b1), whole(w2), whole(b2),
        ],
        out_specs=pl.BlockSpec((tn, E), lambda i: (i, 0)),
        compiler_params=pltpu.CompilerParams(
            dimension_semantics=("parallel",)),
        cost_estimate=pl.CostEstimate(flops=flops, transcendentals=0,
                                      bytes_accessed=bytes_accessed),
    )(t_idx, a_idx, d_idx, type_tab_p, attr_tab_p, depth_tab_p, w1, b1, w2, b2)

    return out[:N]


def init_params(key, emb_dim, num_nodetypes, num_nodeattributes, max_depth):
    E = emb_dim
    ks = jax.random.split(key, 7)
    # Embedding tables ~ N(0,1) (like torch.nn.Embedding default).
    type_emb = jax.random.normal(ks[0], (num_nodetypes, E), jnp.float32)
    attr_emb = jax.random.normal(ks[1], (num_nodeattributes, E), jnp.float32)
    depth_emb = jax.random.normal(ks[2], (max_depth + 1, E), jnp.float32)
    # Linear layers: uniform(+-1/sqrt(fan_in)) like torch.nn.Linear.
    lim1 = 1.0 / jnp.sqrt(3.0 * E)
    lim2 = 1.0 / jnp.sqrt(2.0 * E)
    w1 = jax.random.uniform(ks[3], (3 * E, 2 * E), jnp.float32, -lim1, lim1)
    b1 = jax.random.uniform(ks[4], (1, 2 * E), jnp.float32, -lim1, lim1)
    w2 = jax.random.uniform(ks[5], (2 * E, E), jnp.float32, -lim2, lim2)
    b2 = jax.random.uniform(ks[6], (1, E), jnp.float32, -lim2, lim2)
    return dict(type_emb=type_emb, attr_emb=attr_emb, depth_emb=depth_emb,
                w1=w1, b1=b1, w2=w2, b2=b2)


def reference_forward(x, depth, params, max_depth):
    """Pure-JAX reference (mirrors the PyTorch forward)."""
    hi = jax.lax.Precision.HIGHEST
    depth = jnp.where(depth > max_depth, max_depth, depth)
    mlp_in = jnp.concatenate(
        [params["type_emb"][x[:, 0]],
         params["attr_emb"][x[:, 1]],
         params["depth_emb"][depth]], axis=-1)
    h = jnp.maximum(
        jnp.dot(mlp_in, params["w1"], precision=hi) + params["b1"], 0.0)
    return jnp.dot(h, params["w2"], precision=hi) + params["b2"]


if __name__ == "__main__":
    emb_dim = 32
    num_nodetypes = 20
    num_nodeattributes = 30
    max_depth = 10
    N = 16  # number of AST nodes

    key = jax.random.PRNGKey(0)
    k_param, k_type, k_attr, k_depth = jax.random.split(key, 4)

    params = init_params(k_param, emb_dim, num_nodetypes, num_nodeattributes,
                         max_depth)

    # x: [N, 2] int features (col 0 = node type, col 1 = node attribute)
    x = jnp.stack([
        jax.random.randint(k_type, (N,), 0, num_nodetypes, jnp.int32),
        jax.random.randint(k_attr, (N,), 0, num_nodeattributes, jnp.int32),
    ], axis=1)
    # depth: [N], intentionally allow values beyond max_depth to exercise clamp
    depth = jax.random.randint(k_depth, (N,), 0, max_depth + 4, jnp.int32)

    out = ast_node_encoder_forward(x, depth, params, max_depth)
    out = jax.block_until_ready(out)

    ref = reference_forward(x, depth, params, max_depth)
    assert out.shape == (N, emb_dim)
    assert jnp.allclose(out, ref, atol=1e-5, rtol=1e-5)

    print("KERNEL_OK")
</pallas_src>

<mosaic_0001>
module attributes {stable_mosaic.version = 11 : i64} {
  func.func @_ast_encoder_kernel(%arg0: i32, %arg1: memref<16x1xi32, #tpu.memory_space<vmem>>, %arg2: memref<16x1xi32, #tpu.memory_space<vmem>>, %arg3: memref<16x1xi32, #tpu.memory_space<vmem>>, %arg4: memref<24x32xf32, #tpu.memory_space<vmem>>, %arg5: memref<32x32xf32, #tpu.memory_space<vmem>>, %arg6: memref<16x32xf32, #tpu.memory_space<vmem>>, %arg7: memref<96x64xf32, #tpu.memory_space<vmem>>, %arg8: memref<1x64xf32, #tpu.memory_space<vmem>>, %arg9: memref<64x32xf32, #tpu.memory_space<vmem>>, %arg10: memref<1x32xf32, #tpu.memory_space<vmem>>, %arg11: memref<16x32xf32, #tpu.memory_space<vmem>>) attributes {dimension_semantics = [#tpu.dimension_semantics<parallel>], iteration_bounds = array<i64: 1>, scalar_prefetch = 0 : i64, scratch_operands = 0 : i64, tpu.core_type = #tpu.core_type<tc>, window_params = [{transform_indices = @transform_0, window_bounds = array<i64: 16, 1>}, {transform_indices = @transform_1, window_bounds = array<i64: 16, 1>}, {transform_indices = @transform_2, window_bounds = array<i64: 16, 1>}, {pipeline_mode = #tpu.pipeline_mode<synchronous>, transform_indices = @transform_3, window_bounds = array<i64: 24, 32>}, {pipeline_mode = #tpu.pipeline_mode<synchronous>, transform_indices = @transform_4, window_bounds = array<i64: 32, 32>}, {pipeline_mode = #tpu.pipeline_mode<synchronous>, transform_indices = @transform_5, window_bounds = array<i64: 16, 32>}, {pipeline_mode = #tpu.pipeline_mode<synchronous>, transform_indices = @transform_6, window_bounds = array<i64: 96, 64>}, {pipeline_mode = #tpu.pipeline_mode<synchronous>, transform_indices = @transform_7, window_bounds = array<i64: 1, 64>}, {pipeline_mode = #tpu.pipeline_mode<synchronous>, transform_indices = @transform_8, window_bounds = array<i64: 64, 32>}, {pipeline_mode = #tpu.pipeline_mode<synchronous>, transform_indices = @transform_9, window_bounds = array<i64: 1, 32>}, {transform_indices = @transform_10, window_bounds = array<i64: 16, 32>}]} {
    %c0 = arith.constant 0 : index
    %c0_0 = arith.constant 0 : index
    %0 = vector.load %arg1[%c0, %c0_0] : memref<16x1xi32, #tpu.memory_space<vmem>>, vector<16x1xi32>
    %1 = tpu.iota {dimensions = array<i32: 1>} : vector<16x24xi32>
    %2 = vector.broadcast %0 : vector<16x1xi32> to vector<16x24xi32>
    %3 = arith.cmpi eq, %2, %1 : vector<16x24xi32>
    %4 = arith.extui %3 : vector<16x24xi1> to vector<16x24xi32>
    %5 = arith.sitofp %4 : vector<16x24xi32> to vector<16x24xf32>
    %c0_1 = arith.constant 0 : index
    %c0_2 = arith.constant 0 : index
    %6 = vector.load %arg4[%c0_1, %c0_2] : memref<24x32xf32, #tpu.memory_space<vmem>>, vector<24x32xf32>
    %cst = arith.constant dense<0.000000e+00> : vector<16x32xf32>
    %7 = tpu.matmul %5, %6, %cst {dimension_numbers = #tpu.dot_dimension_numbers<[1], [0], [0], [1], [0, 0, 1, 1], [], []>, precision = #tpu.contract_precision<fp32>} : vector<16x24xf32>, vector<24x32xf32>, vector<16x32xf32> -> vector<16x32xf32>
    %c0_3 = arith.constant 0 : index
    %c0_4 = arith.constant 0 : index
    %8 = vector.load %arg2[%c0_3, %c0_4] : memref<16x1xi32, #tpu.memory_space<vmem>>, vector<16x1xi32>
    %9 = tpu.iota {dimensions = array<i32: 1>} : vector<16x32xi32>
    %10 = vector.broadcast %8 : vector<16x1xi32> to vector<16x32xi32>
    %11 = arith.cmpi eq, %10, %9 : vector<16x32xi32>
    %12 = arith.extui %11 : vector<16x32xi1> to vector<16x32xi32>
    %13 = arith.sitofp %12 : vector<16x32xi32> to vector<16x32xf32>
    %c0_5 = arith.constant 0 : index
    %c0_6 = arith.constant 0 : index
    %14 = vector.load %arg5[%c0_5, %c0_6] : memref<32x32xf32, #tpu.memory_space<vmem>>, vector<32x32xf32>
    %cst_7 = arith.constant dense<0.000000e+00> : vector<16x32xf32>
    %15 = tpu.matmul %13, %14, %cst_7 {dimension_numbers = #tpu.dot_dimension_numbers<[1], [0], [0], [1], [0, 0, 1, 1], [], []>, precision = #tpu.contract_precision<fp32>} : vector<16x32xf32>, vector<32x32xf32>, vector<16x32xf32> -> vector<16x32xf32>
    %c0_8 = arith.constant 0 : index
    %c0_9 = arith.constant 0 : index
    %16 = vector.load %arg3[%c0_8, %c0_9] : memref<16x1xi32, #tpu.memory_space<vmem>>, vector<16x1xi32>
    %17 = tpu.iota {dimensions = array<i32: 1>} : vector<16x16xi32>
    %18 = vector.broadcast %16 : vector<16x1xi32> to vector<16x16xi32>
    %19 = arith.cmpi eq, %18, %17 : vector<16x16xi32>
    %20 = arith.extui %19 : vector<16x16xi1> to vector<16x16xi32>
    %21 = arith.sitofp %20 : vector<16x16xi32> to vector<16x16xf32>
    %c0_10 = arith.constant 0 : index
    %c0_11 = arith.constant 0 : index
    %22 = vector.load %arg6[%c0_10, %c0_11] : memref<16x32xf32, #tpu.memory_space<vmem>>, vector<16x32xf32>
    %cst_12 = arith.constant dense<0.000000e+00> : vector<16x32xf32>
    %23 = tpu.matmul %21, %22, %cst_12 {dimension_numbers = #tpu.dot_dimension_numbers<[1], [0], [0], [1], [0, 0, 1, 1], [], []>, precision = #tpu.contract_precision<fp32>} : vector<16x16xf32>, vector<16x32xf32>, vector<16x32xf32> -> vector<16x32xf32>
    %c0_13 = arith.constant 0 : index
    %c0_14 = arith.constant 0 : index
    %24 = vector.load %arg7[%c0_13, %c0_14] : memref<96x64xf32, #tpu.memory_space<vmem>>, vector<32x64xf32>
    %cst_15 = arith.constant dense<0.000000e+00> : vector<16x64xf32>
    %25 = tpu.matmul %7, %24, %cst_15 {dimension_numbers = #tpu.dot_dimension_numbers<[1], [0], [0], [1], [0, 0, 1, 1], [], []>, precision = #tpu.contract_precision<fp32>} : vector<16x32xf32>, vector<32x64xf32>, vector<16x64xf32> -> vector<16x64xf32>
    %c32 = arith.constant 32 : index
    %c0_16 = arith.constant 0 : index
    %26 = vector.load %arg7[%c32, %c0_16] : memref<96x64xf32, #tpu.memory_space<vmem>>, vector<32x64xf32>
    %cst_17 = arith.constant dense<0.000000e+00> : vector<16x64xf32>
    %27 = tpu.matmul %15, %26, %cst_17 {dimension_numbers = #tpu.dot_dimension_numbers<[1], [0], [0], [1], [0, 0, 1, 1], [], []>, precision = #tpu.contract_precision<fp32>} : vector<16x32xf32>, vector<32x64xf32>, vector<16x64xf32> -> vector<16x64xf32>
    %28 = arith.addf %25, %27 : vector<16x64xf32>
    %c64 = arith.constant 64 : index
    %c0_18 = arith.constant 0 : index
    %29 = vector.load %arg7[%c64, %c0_18] : memref<96x64xf32, #tpu.memory_space<vmem>>, vector<32x64xf32>
    %cst_19 = arith.constant dense<0.000000e+00> : vector<16x64xf32>
    %30 = tpu.matmul %23, %29, %cst_19 {dimension_numbers = #tpu.dot_dimension_numbers<[1], [0], [0], [1], [0, 0, 1, 1], [], []>, precision = #tpu.contract_precision<fp32>} : vector<16x32xf32>, vector<32x64xf32>, vector<16x64xf32> -> vector<16x64xf32>
    %31 = arith.addf %28, %30 : vector<16x64xf32>
    %c0_20 = arith.constant 0 : index
    %c0_21 = arith.constant 0 : index
    %32 = vector.load %arg8[%c0_20, %c0_21] : memref<1x64xf32, #tpu.memory_space<vmem>>, vector<1x64xf32>
    %33 = vector.broadcast %32 : vector<1x64xf32> to vector<16x64xf32>
    %34 = arith.addf %31, %33 : vector<16x64xf32>
    %cst_22 = arith.constant 0.000000e+00 : f32
    %35 = vector.broadcast %cst_22 : f32 to vector<16x64xf32>
    %36 = arith.maximumf %34, %35 : vector<16x64xf32>
    %c0_23 = arith.constant 0 : index
    %c0_24 = arith.constant 0 : index
    %37 = vector.load %arg9[%c0_23, %c0_24] : memref<64x32xf32, #tpu.memory_space<vmem>>, vector<64x32xf32>
    %cst_25 = arith.constant dense<0.000000e+00> : vector<16x32xf32>
    %38 = tpu.matmul %36, %37, %cst_25 {dimension_numbers = #tpu.dot_dimension_numbers<[1], [0], [0], [1], [0, 0, 1, 1], [], []>, precision = #tpu.contract_precision<fp32>} : vector<16x64xf32>, vector<64x32xf32>, vector<16x32xf32> -> vector<16x32xf32>
    %c0_26 = arith.constant 0 : index
    %c0_27 = arith.constant 0 : index
    %39 = vector.load %arg10[%c0_26, %c0_27] : memref<1x32xf32, #tpu.memory_space<vmem>>, vector<1x32xf32>
    %40 = vector.broadcast %39 : vector<1x32xf32> to vector<16x32xf32>
    %41 = arith.addf %38, %40 : vector<16x32xf32>
    %c0_28 = arith.constant 0 : index
    %c0_29 = arith.constant 0 : index
    %42 = vector.load %arg11[%c0_28, %c0_29] : memref<16x32xf32, #tpu.memory_space<vmem>>, vector<16x32xf32>
    tpu.vector_store %arg11[%c0_28, %c0_29], %41 {strides = array<i32>} : memref<16x32xf32, #tpu.memory_space<vmem>>, vector<16x32xf32>,
    return
  }
  func.func @transform_0(%arg0: i32) -> (i32, i32) {
    %c0_i32 = arith.constant 0 : i32
    %c0_i32_0 = arith.constant 0 : i32
    return %arg0, %c0_i32 : i32, i32
  }
  func.func @transform_1(%arg0: i32) -> (i32, i32) {
    %c0_i32 = arith.constant 0 : i32
    %c0_i32_0 = arith.constant 0 : i32
    return %arg0, %c0_i32 : i32, i32
  }
  func.func @transform_2(%arg0: i32) -> (i32, i32) {
    %c0_i32 = arith.constant 0 : i32
    %c0_i32_0 = arith.constant 0 : i32
    return %arg0, %c0_i32 : i32, i32
  }
  func.func @transform_3(%arg0: i32) -> (i32, i32) {
    %c0_i32 = arith.constant 0 : i32
    %c0_i32_0 = arith.constant 0 : i32
    %c0_i32_1 = arith.constant 0 : i32
    return %c0_i32, %c0_i32_0 : i32, i32
  }
  func.func @transform_4(%arg0: i32) -> (i32, i32) {
    %c0_i32 = arith.constant 0 : i32
    %c0_i32_0 = arith.constant 0 : i32
    %c0_i32_1 = arith.constant 0 : i32
    return %c0_i32, %c0_i32_0 : i32, i32
  }
  func.func @transform_5(%arg0: i32) -> (i32, i32) {
    %c0_i32 = arith.constant 0 : i32
    %c0_i32_0 = arith.constant 0 : i32
    %c0_i32_1 = arith.constant 0 : i32
    return %c0_i32, %c0_i32_0 : i32, i32
  }
  func.func @transform_6(%arg0: i32) -> (i32, i32) {
    %c0_i32 = arith.constant 0 : i32
    %c0_i32_0 = arith.constant 0 : i32
    %c0_i32_1 = arith.constant 0 : i32
    return %c0_i32, %c0_i32_0 : i32, i32
  }
  func.func @transform_7(%arg0: i32) -> (i32, i32) {
    %c0_i32 = arith.constant 0 : i32
    %c0_i32_0 = arith.constant 0 : i32
    %c0_i32_1 = arith.constant 0 : i32
    return %c0_i32, %c0_i32_0 : i32, i32
  }
  func.func @transform_8(%arg0: i32) -> (i32, i32) {
    %c0_i32 = arith.constant 0 : i32
    %c0_i32_0 = arith.constant 0 : i32
    %c0_i32_1 = arith.constant 0 : i32
    return %c0_i32, %c0_i32_0 : i32, i32
  }
  func.func @transform_9(%arg0: i32) -> (i32, i32) {
    %c0_i32 = arith.constant 0 : i32
    %c0_i32_0 = arith.constant 0 : i32
    %c0_i32_1 = arith.constant 0 : i32
    return %c0_i32, %c0_i32_0 : i32, i32
  }
  func.func @transform_10(%arg0: i32) -> (i32, i32) {
    %c0_i32 = arith.constant 0 : i32
    %c0_i32_0 = arith.constant 0 : i32
    return %arg0, %c0_i32 : i32, i32
  }
}

</mosaic_0001>

<bundles_post_ra>
// kernel: tpu_custom_call.1
= control target key start
LH: loop header
LB: loop body
LE: loop exit
PB: predicated region body
PF: predicated region fallthrough
CT: control target
= control target key end

     0   :  { %v5103_v2 = vmov 0   ;;  %s5549_s0 = inlined_call_operand.vmem [shape: s32[16,1], index: 0, kind: input, shape index: {}]   ;;  %s5550_s1 = inlined_call_operand.vmem [shape: s32[16,1], index: 1, kind: input, shape index: {}]   ;;  %s5551_s2 = inlined_call_operand.vmem [shape: s32[16,1], index: 2, kind: input, shape index: {}]   ;;  %s5552_s3 = inlined_call_operand.vmem [shape: f32[24,32], index: 3, kind: input, shape index: {}]   ;;  %s5553_s4 = inlined_call_operand.vmem [shape: f32[32,32], index: 4, kind: input, shape index: {}]   ;;  %s5554_s5 = inlined_call_operand.vmem [shape: f32[16,32], index: 5, kind: input, shape index: {}]   ;;  %s5555_s6 = inlined_call_operand.vmem [shape: f32[96,64], index: 6, kind: input, shape index: {}]   ;;  %s5556_s7 = inlined_call_operand.vmem [shape: f32[1,64], index: 7, kind: input, shape index: {}]   ;;  %s5557_s8 = inlined_call_operand.vmem [shape: f32[64,32], index: 8, kind: input, shape index: {}]   ;;  %s5558_s9 = inlined_call_operand.vmem [shape: f32[1,32], index: 9, kind: input, shape index: {}]   ;;  %s5559_s10 = inlined_call_operand.hbm [shape: f32[16,32], index: 10, kind: output, shape index: {}]  }
   0x1   :  { %v36_v0 = vld [vmem:[%s5549_s0] sm:$0xff]  ;;  %5077 = vset.pattern.permute.xlu0 %v5103_v2  ;;  %5078 = vset.pattern.permute.xlu1 %v5103_v2  ;;  %v592_v4 = vld [vmem:[%s5553_s4 + $0x8] sm:$0xff] }
   0x2   :  { %v577_v1 = vld [vmem:[%s5550_s1] sm:$0xff]  ;;  %41 = vperm.xlu0 %5077, %v36_v0  }
   0x3   :  { %580 = vperm.xlu1 %5078, %v577_v1   ;;  %v591_v3 = vld [vmem:[%s5553_s4] sm:$0xff] }
   0x4   :  { %15 = vsyncpa [#allocation3], 0  ;;  %v37_v5 = vld [vmem:[%s5549_s0 + $0x8] sm:$0xff]  ;;  %v603_v7 = vand.u32 4294901760, %v591_v3  ;;  %v606_v8 = vand.u32 4294901760, %v592_v4  ;;  %v593_v11 = vld [vmem:[%s5553_s4 + $0x10] sm:$0xff]  ;;  %v38_v57 = vlaneseq }
   0x5   :  { %v578_v6 = vld [vmem:[%s5550_s1 + $0x8] sm:$0xff]  ;;  %v594_v12 = vld [vmem:[%s5553_s4 + $0x18] sm:$0xff]  ;;  %v52_v13 = vld [vmem:[%s5552_s3] sm:$0xff]  ;;  %v609_v15 = vand.u32 4294901760, %v593_v11  ;;  %vm55_vm0 = vcmask 195584   ;;  %vm595_vm1 = vcmask 261120  }
   0x6   :  { %v693_v9 = vsub.f32 %v591_v3, %v603_v7  ;;  %v700_v10 = vsub.f32 %v592_v4, %v606_v8  ;;  %44 = vperm.xlu0 %5077, %v37_v5   ;;  %v53_v14 = vld [vmem:[%s5552_s3 + $0x8] sm:$0xff]  ;;  %v612_v16 = vand.u32 4294901760, %v594_v12  ;;  %v1130_v17 = vld [vmem:[%s5551_s2] sm:$0xff]  ;;  %v63_v20 = vand.u32 4294901760, %v52_v13  ;;  %v54_v30 = vld [vmem:[%s5552_s3 + $0x10] sm:$0xff]  ;;  %s5105_s1 = smov [#allocation2]  }
   0x7   :  { %583 = vperm.xlu1 %5078, %v578_v6   ;;  %v1131_v18 = vld [vmem:[%s5551_s2 + $0x8] sm:$0xff]  ;;  %v66_v21 = vand.u32 4294901760, %v53_v14  ;;  %v707_v22 = vsub.f32 %v593_v11, %v609_v15  ;;  %v5202_v29 = vpack.c.bf16 %v606_v8, %v603_v7  ;;  %v5210_v33 = vand.u32 4294901760, %v54_v30  ;;  %s3891_s11 = sshll.u32 %s5105_s1, 4  ;;  %s3892_s11 = int_to_ptr.vmem [resolvable:$true] %s3891_s11 }
   0x8   :  { %v4700_v19 = vpack.c.bf16 %v700_v10, %v693_v9  ;;  %v714_v23 = vsub.f32 %v594_v12, %v612_v16  ;;  %v152_v25 = vsub.f32 %v52_v13, %v63_v20  ;;  %v5208_v32 = vpack.c.bf16 %v612_v16, %v609_v15  ;;  %s5079_s12 = scalar_lea.vmem %s3892_s11, 256  ;;  %p5084_p1 = scmp.lt.s32.totalorder %s3892_s11, %s3892_s11 }
   0x9   :  { %v5199_v24 = vpack.c.bf16 %v66_v21, %v63_v20  ;;  %v159_v27 = vsub.f32 %v53_v14, %v66_v21  ;;  %v694_v39 = vand.u32 4294901760, %v693_v9  ;;  %v701_v40 = vand.u32 4294901760, %v700_v10  ;;  %p5080_p0 = scmp.ne.s32.totalorder %s3892_s11, %s5079_s12  ;;  %p5085_p2 = scmp.lt.s32.totalorder %s5079_s12, %s5079_s12 }
   0xa   :  { %4701 = vmatprep.subr.bf16.mxu1 %v4700_v19  ;;  %1133 = vperm.xlu0 %5077, %v1130_v17   ;;  %v4704_v26 = vpack.c.bf16 %v714_v23, %v707_v22  ;;  %v153_v28 = vand.u32 4294901760, %v152_v25  ;;  %v708_v42 = vand.u32 4294901760, %v707_v22  ;;  %v715_v43 = vand.u32 4294901760, %v714_v23 }
   0xb   :  { %1136 = vperm.xlu1 %5078, %v1131_v18   ;;  %4703 = vmatpush3.bf16.msra.mxu1 %v4700_v19  ;;  %v160_v31 = vand.u32 4294901760, %v159_v27  ;;  %v5218_v41 = vpack.c.bf16 %v701_v40, %v694_v39  ;;  %v5220_v44 = vpack.c.bf16 %v159_v27, %v152_v25  ;;  %v695_v47 = vsub.f32 %v693_v9, %v694_v39  ;;  %p5086_p3 = por %p5085_p2, %p5084_p1 }
   0xc   :  { %4661 = vmatprep.subr.bf16.mxu0 %v5199_v24  ;;  %4705 = vmatprep.subr.bf16.mxu1 %v4704_v26  ;;  %v154_v34 = vsub.f32 %v152_v25, %v153_v28  ;;  %v5222_v45 = vpack.c.bf16 %v715_v43, %v708_v42  ;;  %v702_v48 = vsub.f32 %v700_v10, %v701_v40  ;;  %v5230_v58 = vand.u32 127, %v38_v57 }
   0xd   :  { %4663 = vmatpush3.bf16.msra.mxu0 %v5199_v24  ;;  %v161_v35 = vsub.f32 %v159_v27, %v160_v31  ;;  %v5224_v46 = vpack.c.bf16 %v160_v31, %v153_v28  ;;  %v696_v49 = vand.u32 4294901760, %v695_v47  ;;  %v709_v52 = vsub.f32 %v707_v22, %v708_v42  ;;  %v1144_v28 = vld [vmem:[%s5554_s5] sm:$0xff]  ;;  %p5087_p4 = pnand %p5086_p3, %p5080_p0 }
   0xe   :  { %4190 = vmatprep.subr.mxu0 %v5210_v33  ;;  %v155_v36 = vand.u32 4294901760, %v154_v34  ;;  %v703_v50 = vand.u32 4294901760, %v702_v48  ;;  %v716_v53 = vsub.f32 %v714_v23, %v715_v43  ;;  %v5104_v61 = vmov 0.0  }
   0xf   :  { %4707 = vmatpush3.bf16.msra.mxu1 %v4704_v26  ;;  %v162_v37 = vand.u32 4294901760, %v161_v35  ;;  %v710_v54 = vand.u32 4294901760, %v709_v52  ;;  %v166_v0 = vsub.f32 %v54_v30, %v5210_v33  ;;  %v1145_v30 = vld [vmem:[%s5554_s5 + $0x8] sm:$0xff]  ;;  %v1154_v31 = vand.u32 4294901760, %v1144_v28 }
  0x10   :  { %4709 = vmatprep.subr.bf16.mxu1 %v5202_v29  ;;  %v5226_v51 = vpack.c.bf16 %v703_v50, %v696_v49  ;;  %v717_v55 = vand.u32 4294901760, %v716_v53  ;;  %v1157_v34 = vand.u32 4294901760, %v1145_v30  ;;  %vm1146_vm8 = vcmask 130048  }
  0x11   :  { %4191 = vmatpush3.msra.mxu0 %v5210_v33  ;;  %v5215_v38 = vpack.c.bf16 %v162_v37, %v155_v36  ;;  %v167_v10 = vand.u32 4294901760, %v166_v0  ;;  %vm3297_vm9 = vcmask 523264  }
  0x12   :  { %v5228_v56 = vpack.c.bf16 %v717_v55, %v710_v54  ;;  %v1249_v37 = vsub.f32 %v1145_v30, %v1157_v34  ;;  %v4732_v48 = vpack.c.bf16 %v1157_v34, %v1154_v31 }
  0x13   :  { %4665 = vmatprep.subr.bf16.mxu0 %v5215_v38  ;;  %v168_v20 = vsub.f32 %v166_v0, %v167_v10 }
  0x14   :  { %v1250_v42 = vand.u32 4294901760, %v1249_v37 }
  0x15   :  { %v169_v25 = vand.u32 4294901760, %v168_v20 }
  0x16   :  { %v1251_v47 = vsub.f32 %v1249_v37, %v1250_v42 }
  0x18   :  { %v1252_v52 = vand.u32 4294901760, %v1251_v47 }
  0x81   :  { %v42_v59 = vpop.permute.xlu0 %41 }
  0x82   :  { %v581_v60 = vpop.permute.xlu1 %580  ;;  %vm46_vm2 = vcmp.eq.s32.totalorder %v42_v59, %v5230_v58  ;;  %v1660_v59 = vld [vmem:[%s5555_s6 + $0x28] sm:$0xff] }
  0x83   :  { %vm585_vm3 = vcmp.eq.s32.totalorder %v581_v60, %v5230_v58  ;;  %v5235_v62 = vsel %vm46_vm2, 1.0, %v5104_v61 }
  0x84   :  { %v5238_v63 = vsel %vm585_vm3, 1.0, %v5104_v61  ;;  %v57_v1 = vsel %vm55_vm0, %v5235_v62, 0 }
  0x85   :  { %v597_v2 = vsel %vm595_vm1, %v5238_v63, 0  ;;  %v45_v3 = vpop.permute.xlu0 %44  ;;  %v131_v5 = vsub.f32 %v57_v1, %v57_v1  ;;  %v1661_v1 = vld [vmem:[%s5555_s6 + $0x30] sm:$0xff] }
  0x86   :  { %v584_v4 = vpop.permute.xlu1 %583  ;;  %v5245_v6 = vsub.f32 %v597_v2, %v597_v2  ;;  %vm47_vm4 = vcmp.eq.s32.totalorder %v45_v3, %v5230_v58  ;;  %v1662_v2 = vld [vmem:[%s5555_s6 + $0x38] sm:$0xff]  ;;  %v1676_v3 = vand.u32 4294901760, %v1661_v1 }
  0x87   :  { %vm586_vm5 = vcmp.eq.s32.totalorder %v584_v4, %v5230_v58  ;;  %v5250_v7 = vsel %vm47_vm4, 1.0, %v5104_v61  ;;  %v132_v9 = vand.u32 4294901760, %v131_v5  ;;  %v1679_v4 = vand.u32 4294901760, %v1662_v2 }
  0x88   :  { %v5253_v8 = vsel %vm586_vm5, 1.0, %v5104_v61  ;;  %4270 = vmatprep.mubr.f32.mxu1 %v5245_v6  ;;  %v60_v11 = vsel %vm55_vm0, %v5250_v7, 0  ;;  %v673_v13 = vand.u32 4294901760, %v5245_v6 }
  0x89   :  { %v600_v12 = vsel %vm595_vm1, %v5253_v8, 0  ;;  %v141_v14 = vsub.f32 %v60_v11, %v60_v11  ;;  %v133_v15 = vsub.f32 %v131_v5, %v132_v9  ;;  %v1134_v27 = vpop.permute.xlu0 %1133  ;;  %v1781_v11 = vsub.f32 %v1662_v2, %v1679_v4 }
  0x8a   :  { %v5261_v16 = vsub.f32 %v600_v12, %v600_v12  ;;  %v1137_v17 = vpop.permute.xlu1 %1136  ;;  %vm1138_vm7 = vcmp.eq.s32.totalorder %v1134_v27, %v5230_v58  ;;  %v674_v35 = vsub.f32 %v5245_v6, %v673_v13 }
  0x8b   :  { %vm1139_vm6 = vcmp.eq.s32.totalorder %v1137_v17, %v5230_v58  ;;  %v134_v18 = vand.u32 4294901760, %v133_v15  ;;  %v142_v19 = vand.u32 4294901760, %v141_v14  ;;  %v3918_v36 = vsel %vm1138_vm7, 1.0, %v5104_v61  ;;  %v1659_v58 = vld [vmem:[%s5555_s6 + $0x20] sm:$0xff] }
  0x8c   :  { %4271 = vmatmul.mubr.f32.vlgmr.msra.gmra.mrb[0].mxu1 %v5261_v16  ;;  %v5269_v21 = vsel %vm1139_vm6, 1.0, %v5104_v61  ;;  %v683_v26 = vand.u32 4294901760, %v5261_v16  ;;  %v1148_v39 = vsel %vm1146_vm8, %v3918_v36, 0  ;;  %v1670_v60 = vand.u32 4294901760, %v1659_v58 }
  0x8d   :  { %4711 = vmatpush3.bf16.msra.mxu1 %v5202_v29  ;;  %4281 = vmatprep.mubr.f32.mxu1 %v673_v13  ;;  %v143_v22 = vsub.f32 %v141_v14, %v142_v19  ;;  %v1151_v43 = vsel %vm1146_vm8, %v5269_v21, 0  ;;  %v1673_v61 = vand.u32 4294901760, %v1660_v59  ;;  %v1782_v15 = vand.u32 4294901760, %v1781_v11 }
  0x8e   :  { %4192 = vmatprep.mubr.f32.mxu0 %v134_v18  ;;  %4713 = vmatprep.subr.bf16.mxu1 %v5208_v32  ;;  %v684_v40 = vsub.f32 %v5261_v16, %v683_v26 }
  0x8f   :  { %v144_v23 = vand.u32 4294901760, %v143_v22  ;;  %v1783_v18 = vsub.f32 %v1781_v11, %v1782_v15 }
  0x91   :  { %4715 = vmatpush3.bf16.msra.mxu1 %v5208_v32  ;;  %4193 = vmatmul.mubr.f32.vlgmr.msra.gmra.mrb[0].mxu0 %v144_v23  ;;  %v1784_v20 = vand.u32 4294901760, %v1783_v18 }
  0x92   :  { %4717 = vmatprep.subr.bf16.mxu1 %v5218_v41  ;;  %4667 = vmatpush3.bf16.msra.mxu0 %v5215_v38  ;;  %v675_v38 = vand.u32 4294901760, %v674_v35 }
  0x93   :  { %4201 = vmatprep.mubr.msk.f32.mxu0 %vm55_vm0, %v5235_v62  ;;  %4199 = vmatprep.subr.mxu0 %v169_v25 }
  0x94   :  { %4282 = vmatmul.mubr.f32.vlgmr.msra.gmra.mrb[0].mxu1 %v683_v26 }
  0x95   :  { %4719 = vmatpush3.bf16.msra.mxu1 %v5218_v41  ;;  %4292 = vmatprep.mubr.msk.f32.mxu1 %vm595_vm1, %v5238_v63 }
  0x96   :  { %4721 = vmatprep.subr.bf16.mxu1 %v5222_v45  ;;  %4200 = vmatpush3.msra.mxu0 %v169_v25 }
  0x97   :  { %4669 = vmatprep.subr.bf16.mxu0 %v5220_v44 }
  0x99   :  { %4723 = vmatpush3.bf16.msra.mxu1 %v5222_v45  ;;  %4202 = vmatmul.mubr.msk.f32.vlgmr.msra.gmra.mrb[0].mxu0 %vm55_vm0, %v5250_v7  ;;  %v685_v45 = vand.u32 4294901760, %v684_v40 }
  0x9a   :  { %4725 = vmatprep.subr.bf16.mxu1 %v5202_v29  ;;  %4671 = vmatpush3.bf16.msra.mxu0 %v5220_v44  ;;  %v1231_v44 = vsub.f32 %v1151_v43, %v1151_v43 }
  0x9b   :  { %4210 = vmatprep.mubr.f32.mxu0 %v131_v5  ;;  %4208 = vmatprep.subr.mxu0 %v166_v0 }
  0x9c   :  { %4293 = vmatmul.mubr.msk.f32.vlgmr.msra.gmra.mrb[0].mxu1 %vm595_vm1, %v5253_v8  ;;  %v1232_v49 = vand.u32 4294901760, %v1231_v44 }
  0x9d   :  { %4727 = vmatpush3.bf16.msra.mxu1 %v5202_v29  ;;  %4303 = vmatprep.mubr.msk.f32.mxu1 %vm595_vm1, %v5238_v63 }
  0x9e   :  { %4729 = vmatprep.subr.bf16.mxu1 %v5208_v32  ;;  %4209 = vmatpush3.msra.mxu0 %v166_v0  ;;  %v1233_v53 = vsub.f32 %v1231_v44, %v1232_v49  ;;  %v1767_v0 = vsub.f32 %v1660_v59, %v1673_v61 }
  0x9f   :  { %4673 = vmatprep.subr.bf16.mxu0 %v5199_v24 }
  0xa0   :  { %v1768_v6 = vand.u32 4294901760, %v1767_v0 }
  0xa1   :  { %4731 = vmatpush3.bf16.msra.mxu1 %v5208_v32  ;;  %4211 = vmatmul.mubr.f32.vlgmr.msra.gmra.mrb[0].mxu0 %v141_v14 }
  0xa2   :  { %4675 = vmatpush3.bf16.msra.mxu0 %v5199_v24  ;;  %4219 = vmatprep.mubr.f32.mxu0 %v132_v9  ;;  %v1769_v9 = vsub.f32 %v1767_v0, %v1768_v6 }
  0xa3   :  { %4217 = vmatprep.subr.mxu0 %v5210_v33 }
  0xa4   :  { %4304 = vmatmul.mubr.msk.f32.vlgmr.msra.gmra.mrb[0].mxu1 %vm595_vm1, %v5253_v8  ;;  %v1770_v13 = vand.u32 4294901760, %v1769_v9 }
  0xa6   :  { %4218 = vmatpush3.msra.mxu0 %v5210_v33 }
  0xa7   :  { %4677 = vmatprep.subr.bf16.mxu0 %v5224_v46 }
  0xa9   :  { %4220 = vmatmul.mubr.f32.vlgmr.msra.gmra.mrb[0].mxu0 %v142_v19 }
  0xaa   :  { %4679 = vmatpush3.bf16.msra.mxu0 %v5224_v46  ;;  %4228 = vmatprep.mubr.msk.f32.mxu0 %vm55_vm0, %v5235_v62 }
  0xab   :  { %4226 = vmatprep.subr.mxu0 %v167_v10 }
  0xae   :  { %4227 = vmatpush3.msra.mxu0 %v167_v10  ;;  %v1774_v10 = vsub.f32 %v1661_v1, %v1676_v3 }
  0xaf   :  { %4681 = vmatprep.subr.bf16.mxu0 %v5199_v24 }
  0xb0   :  { %v1775_v14 = vand.u32 4294901760, %v1774_v10  ;;  %v4776_v23 = vpack.c.bf16 %v1781_v11, %v1774_v10 }
  0xb1   :  { %4229 = vmatmul.mubr.msk.f32.vlgmr.msra.gmra.mrb[0].mxu0 %vm55_vm0, %v5250_v7 }
  0xb2   :  { %4683 = vmatpush3.bf16.msra.mxu0 %v5199_v24  ;;  %4237 = vmatprep.mubr.msk.f32.mxu0 %vm55_vm0, %v5235_v62  ;;  %v1242_v24 = vsub.f32 %v1144_v28, %v1154_v31  ;;  %v5357_v62 = vpack.c.bf16 %v1673_v61, %v1670_v60  ;;  %v1776_v17 = vsub.f32 %v1774_v10, %v1775_v14 }
  0xb3   :  { %4235 = vmatprep.subr.mxu0 %v5210_v33  ;;  %v4792_v26 = vpack.c.bf16 %v1782_v15, %v1775_v14 }
  0xb4   :  { %v1243_v41 = vand.u32 4294901760, %v1242_v24  ;;  %v4740_v57 = vpack.c.bf16 %v1249_v37, %v1242_v24  ;;  %4757 = vmatprep.subr.bf16.mxu1 %v5357_v62  ;;  %v1777_v19 = vand.u32 4294901760, %v1776_v17 }
  0xb5   :  { %4759 = vmatpush3.bf16.msra.mxu1 %v5357_v62 }
  0xb6   :  { %4236 = vmatpush3.msra.mxu0 %v5210_v33  ;;  %v1221_v33 = vsub.f32 %v1148_v39, %v1148_v39  ;;  %v1244_v46 = vsub.f32 %v1242_v24, %v1243_v41 }
  0xb7   :  { %4685 = vmatprep.subr.bf16.mxu0 %v5202_v29 }
  0xb8   :  { %v1245_v50 = vand.u32 4294901760, %v1244_v46 }
  0xb9   :  { %4238 = vmatmul.mubr.msk.f32.vlgmr.msra.gmra.mrb[0].mxu0 %vm55_vm0, %v5250_v7  ;;  %v5367_v7 = vpack.c.bf16 %v1679_v4, %v1676_v3 }
  0xba   :  { %4687 = vmatpush3.bf16.msra.mxu0 %v5202_v29  ;;  %4248 = vmatprep.mubr.f32.mxu0 %v675_v38  ;;  %v1222_v29 = vand.u32 4294901760, %v1221_v33  ;;  %v4736_v54 = vpack.c.bf16 %v1252_v52, %v1245_v50 }
  0xbb   :  { %4689 = vmatprep.subr.bf16.mxu0 %v5208_v32  ;;  %4761 = vmatprep.subr.bf16.mxu1 %v5367_v7 }
  0xbc   :  { %4763 = vmatpush3.bf16.msra.mxu1 %v5367_v7 }
  0xbe   :  { %4691 = vmatpush3.bf16.msra.mxu0 %v5208_v32  ;;  %v1223_v32 = vsub.f32 %v1221_v33, %v1222_v29 }
  0xbf   :  { %4693 = vmatprep.subr.bf16.mxu0 %v5226_v51 }
  0xc0   :  { %v1224_v55 = vand.u32 4294901760, %v1223_v32 }
  0xc1   :  { %4249 = vmatmul.mubr.f32.vlgmr.msra.gmra.mrb[2].mxu0 %v685_v45 }
  0xc2   :  { %4695 = vmatpush3.bf16.msra.mxu0 %v5226_v51  ;;  %4259 = vmatprep.mubr.msk.f32.mxu0 %vm595_vm1, %v5238_v63  ;;  %v1234_v51 = vand.u32 4294901760, %v1233_v53  ;;  %v1760_v63 = vsub.f32 %v1659_v58, %v1670_v60  ;;  %v1657_v53 = vld [vmem:[%s5555_s6 + $0x10] sm:$0xff] }
  0xc3   :  { %4697 = vmatprep.subr.bf16.mxu0 %v5228_v56 }
  0xc4   :  { %v1761_v5 = vand.u32 4294901760, %v1760_v63  ;;  %v4772_v22 = vpack.c.bf16 %v1767_v0, %v1760_v63 }
  0xc6   :  { %4699 = vmatpush3.bf16.msra.mxu0 %v5228_v56  ;;  %v4748_v56 = vpack.c.bf16 %v1250_v42, %v1243_v41  ;;  %v4788_v25 = vpack.c.bf16 %v1768_v6, %v1761_v5 }
  0xc7   :  { %4733 = vmatprep.subr.bf16.mxu0 %v4732_v48 }
  0xc9   :  { %4260 = vmatmul.mubr.msk.f32.vlgmr.msra.gmra.mrb[2].mxu0 %vm595_vm1, %v5253_v8  ;;  %v1762_v8 = vsub.f32 %v1760_v63, %v1761_v5 }
  0xca   :  { %4735 = vmatpush3.bf16.msra.mxu0 %v4732_v48  ;;  %4310 = vmatprep.mubr.f32.mxu0 %v1224_v55 }
  0xcb   :  { %4737 = vmatprep.subr.bf16.mxu0 %v4736_v54  ;;  %v1763_v12 = vand.u32 4294901760, %v1762_v8 }
  0xcd   :  { %4311 = vmatmul.mubr.f32.vlgmr.msra.gmra.mrb[4].mxu0 %v1234_v51  ;;  %v4764_v16 = vpack.c.bf16 %v1770_v13, %v1763_v12  ;;  %v2210_v51 = vand.u32 4294901760, %v1657_v53 }
  0xce   :  { %4317 = vmatprep.mubr.msk.f32.mxu0 %vm1146_vm8, %v3918_v36  ;;  %4739 = vmatpush3.bf16.msra.mxu0 %v4736_v54  ;;  %v1658_v54 = vld [vmem:[%s5555_s6 + $0x18] sm:$0xff] }
  0xcf   :  { %4741 = vmatprep.subr.bf16.mxu0 %v4740_v57  ;;  %4765 = vmatprep.subr.bf16.mxu1 %v4764_v16  ;;  %v2308_v2 = vsub.f32 %v1657_v53, %v2210_v51 }
  0xd1   :  { %v2309_v10 = vand.u32 4294901760, %v2308_v2 }
  0xd5   :  { %4318 = vmatmul.mubr.msk.f32.vlgmr.msra.gmra.mrb[4].mxu0 %vm1146_vm8, %v5269_v21 }
  0xd6   :  { %4324 = vmatprep.mubr.f32.mxu0 %v1221_v33  ;;  %4743 = vmatpush3.bf16.msra.mxu0 %v4740_v57  ;;  %v2213_v57 = vand.u32 4294901760, %v1658_v54 }
  0xd7   :  { %4745 = vmatprep.subr.bf16.mxu0 %v4732_v48 }
  0xd8   :  { %v2315_v3 = vsub.f32 %v1658_v54, %v2213_v57  ;;  %v5418_v13 = vpack.c.bf16 %v2213_v57, %v2210_v51 }
  0xda   :  { %v2316_v11 = vand.u32 4294901760, %v2315_v3 }
  0xdc   :  { %v2317_v17 = vsub.f32 %v2315_v3, %v2316_v11 }
  0xdd   :  { %4325 = vmatmul.mubr.f32.vlgmr.msra.gmra.mrb[4].mxu0 %v1231_v44 }
  0xde   :  { %4331 = vmatprep.mubr.f32.mxu0 %v1222_v29  ;;  %4747 = vmatpush3.bf16.msra.mxu0 %v4732_v48  ;;  %v1655_v29 = vld [vmem:[%s5555_s6] sm:$0xff] }
  0xdf   :  { %4749 = vmatprep.subr.bf16.mxu0 %v4748_v56  ;;  %v2204_v50 = vand.u32 4294901760, %v1655_v29 }
  0xe1   :  { %v5396_v55 = vsub.f32 %v1655_v29, %v2204_v50 }
  0xe3   :  { %v2295_v63 = vand.u32 4294901760, %v5396_v55 }
  0xe5   :  { %4332 = vmatmul.mubr.f32.vlgmr.msra.gmra.mrb[4].mxu0 %v1232_v49  ;;  %v2296_v6 = vsub.f32 %v5396_v55, %v2295_v63 }
  0xe6   :  { %4338 = vmatprep.mubr.msk.f32.mxu0 %vm1146_vm8, %v3918_v36  ;;  %4751 = vmatpush3.bf16.msra.mxu0 %v4748_v56 }
  0xe7   :  { %4753 = vmatprep.subr.bf16.mxu0 %v4732_v48  ;;  %v2297_v14 = vand.u32 4294901760, %v2296_v6 }
  0xed   :  { %4339 = vmatmul.mubr.msk.f32.vlgmr.msra.gmra.mrb[4].mxu0 %vm1146_vm8, %v5269_v21 }
  0xee   :  { %4345 = vmatprep.mubr.msk.f32.mxu0 %vm1146_vm8, %v3918_v36  ;;  %4755 = vmatpush3.bf16.msra.mxu0 %v4732_v48  ;;  %v1656_v48 = vld [vmem:[%s5555_s6 + $0x8] sm:$0xff] }
  0xef   :  { %v2207_v52 = vand.u32 4294901760, %v1656_v48 }
  0xf1   :  { %v5398_v56 = vsub.f32 %v1656_v48, %v2207_v52  ;;  %v5411_v5 = vpack.c.bf16 %v2207_v52, %v2204_v50 }
  0xf3   :  { %v2302_v1 = vand.u32 4294901760, %v5398_v56 }
  0xf5   :  { %4346 = vmatmul.mubr.msk.f32.vlgmr.msra.gmra.mrb[4].mxu0 %vm1146_vm8, %v5269_v21  ;;  %v4768_v21 = vpack.c.bf16 %v1784_v20, %v1777_v19  ;;  %v2303_v9 = vsub.f32 %v5398_v56, %v2302_v1 }
  0xf7   :  { %v2304_v15 = vand.u32 4294901760, %v2303_v9 }
  0xf9   :  { %v4812_v20 = vpack.c.bf16 %v2304_v15, %v2297_v14  ;;  %v3285_v15 = vld [vmem:[%s5557_s8 + $0x18] sm:$0xff] }
 0x177   :  { %v4305_v27 = vpop.f32.mrb[0].mxu1 }
 0x178   :  { %v1120_v28 = vpop.f32.mrb[1].mxu1 }
 0x18c   :  { %v4239_v30 = vpop.f32.mrb[0].mxu0 }
 0x18d   :  { %v567_v31 = vpop.f32.mrb[1].mxu0  ;;  %v2201_v58 = vsel %vm595_vm1, %v4239_v30, 0  ;;  %v2732_v30 = vld [vmem:[%s5555_s6 + $0x48] sm:$0xff] }
 0x18e   :  { %v2198_v49 = vsel %vm595_vm1, %v567_v31, 0  ;;  %v5405_v0 = vand.u32 4294901760, %v2201_v58 }
 0x18f   :  { %v5388_v32 = vand.u32 4294901760, %v2198_v49 }
 0x190   :  { %v2283_v8 = vsub.f32 %v2201_v58, %v5405_v0 }
 0x191   :  { %v2273_v59 = vsub.f32 %v2198_v49, %v5388_v32 }
 0x193   :  { %v2274_v4 = vand.u32 4294901760, %v2273_v59 }
 0x195   :  { %v2275_v12 = vsub.f32 %v2273_v59, %v2274_v4 }
 0x197   :  { %v2276_v18 = vand.u32 4294901760, %v2275_v12 }
 0x19c   :  { %v4261_v34 = vpop.f32.mrb[2].mxu0 }
 0x19d   :  { %v4996_v35 = vadd.f32 %v4305_v27, %v4261_v34  ;;  %v778_v36 = vpop.f32.mrb[3].mxu0  ;;  %v4836_v27 = vpack.c.bf16 %v2302_v1, %v2295_v63 }
 0x19e   :  { %v4997_v24 = vadd.f32 %v1120_v28, %v778_v36  ;;  %v2731_v28 = vld [vmem:[%s5555_s6 + $0x40] sm:$0xff]  ;;  %v2745_v36 = vand.u32 4294901760, %v2732_v30 }
 0x19f   :  { %v1667_v37 = vsel %vm595_vm1, %v4996_v35, 0  ;;  %v2742_v34 = vand.u32 4294901760, %v2731_v28  ;;  %v4840_v35 = vpack.c.bf16 %v2316_v11, %v2309_v10  ;;  %v3283_v11 = vld [vmem:[%s5557_s8 + $0x8] sm:$0xff] }
 0x1a0   :  { %v5372_v38 = vand.u32 4294901760, %v1667_v37  ;;  %v1664_v39 = vsel %vm595_vm1, %v4997_v24, 0 }
 0x1a1   :  { %v1738_v40 = vand.u32 4294901760, %v1664_v39  ;;  %v4852_v49 = vpack.c.bf16 %v2745_v36, %v2742_v34 }
 0x1a2   :  { %v1749_v41 = vsub.f32 %v1667_v37, %v5372_v38  ;;  %v2733_v37 = vld [vmem:[%s5555_s6 + $0x50] sm:$0xff] }
 0x1a3   :  { %v1739_v42 = vsub.f32 %v1664_v39, %v1738_v40  ;;  %v5449_v39 = vsub.f32 %v2731_v28, %v2742_v34 }
 0x1a4   :  { %v1750_v33 = vand.u32 4294901760, %v1749_v41 }
 0x1a5   :  { %v1740_v43 = vand.u32 4294901760, %v1739_v42 }
 0x1a6   :  { %v1751_v44 = vsub.f32 %v1749_v41, %v1750_v33 }
 0x1a7   :  { %v1741_v45 = vsub.f32 %v1739_v42, %v1740_v43 }
 0x1a8   :  { %v1752_v47 = vand.u32 4294901760, %v1751_v44  ;;  %v2833_v44 = vand.u32 4294901760, %v5449_v39 }
 0x1a9   :  { %v1742_v46 = vand.u32 4294901760, %v1741_v45 }
 0x1aa   :  { %v2834_v50 = vsub.f32 %v5449_v39, %v2833_v44 }
 0x1ab   :  { %4356 = vmatprep.mubr.f32.mxu1 %v1742_v46 }
 0x1ac   :  { %4357 = vmatmul.mubr.f32.vlgmr.msra.gmra.mrb[2].mxu1 %v1752_v47 }
 0x1ad   :  { %4767 = vmatpush3.bf16.msra.mxu1 %v4764_v16  ;;  %4367 = vmatprep.mubr.f32.mxu1 %v1738_v40  ;;  %v2310_v16 = vsub.f32 %v2308_v2, %v2309_v10  ;;  %v3282_v10 = vld [vmem:[%s5557_s8] sm:$0xff] }
 0x1ae   :  { %4769 = vmatprep.subr.bf16.mxu1 %v4768_v21  ;;  %v3305_v12 = vand.u32 4294901760, %v3282_v10 }
 0x1b1   :  { %4771 = vmatpush3.bf16.msra.mxu1 %v4768_v21  ;;  %v2318_v21 = vand.u32 4294901760, %v2317_v17  ;;  %v3314_v17 = vand.u32 4294901760, %v3285_v15 }
 0x1b2   :  { %4773 = vmatprep.subr.bf16.mxu1 %v4772_v22 }
 0x1b4   :  { %4368 = vmatmul.mubr.f32.vlgmr.msra.gmra.mrb[2].mxu1 %v5372_v38 }
 0x1b5   :  { %4775 = vmatpush3.bf16.msra.mxu1 %v4772_v22  ;;  %4378 = vmatprep.mubr.f32.mxu1 %v1739_v42  ;;  %v2839_v42 = vsub.f32 %v2732_v30, %v2745_v36 }
 0x1b6   :  { %4777 = vmatprep.subr.bf16.mxu1 %v4776_v23 }
 0x1b7   :  { %v2840_v46 = vand.u32 4294901760, %v2839_v42  ;;  %v4868_v6 = vpack.c.bf16 %v2839_v42, %v5449_v39 }
 0x1b9   :  { %4779 = vmatpush3.bf16.msra.mxu1 %v4776_v23  ;;  %v2841_v53 = vsub.f32 %v2839_v42, %v2840_v46 }
 0x1ba   :  { %4781 = vmatprep.subr.bf16.mxu1 %v5357_v62 }
 0x1bc   :  { %4379 = vmatmul.mubr.f32.vlgmr.msra.gmra.mrb[2].mxu1 %v1749_v41 }
 0x1bd   :  { %4783 = vmatpush3.bf16.msra.mxu1 %v5357_v62  ;;  %4389 = vmatprep.mubr.f32.mxu1 %v1740_v43 }
 0x1be   :  { %4785 = vmatprep.subr.bf16.mxu1 %v5367_v7 }
 0x1c1   :  { %4787 = vmatpush3.bf16.msra.mxu1 %v5367_v7 }
 0x1c2   :  { %4789 = vmatprep.subr.bf16.mxu1 %v4788_v25 }
 0x1c4   :  { %4390 = vmatmul.mubr.f32.vlgmr.msra.gmra.mrb[2].mxu1 %v1750_v33 }
 0x1c5   :  { %4791 = vmatpush3.bf16.msra.mxu1 %v4788_v25  ;;  %4400 = vmatprep.mubr.f32.mxu1 %v1738_v40  ;;  %v4820_v25 = vpack.c.bf16 %v5398_v56, %v5396_v55  ;;  %v2835_v56 = vand.u32 4294901760, %v2834_v50 }
 0x1c6   :  { %4793 = vmatprep.subr.bf16.mxu1 %v4792_v26 }
 0x1c8   :  { %v5402_v60 = vpop.f32.mrb[4].mxu0 }
 0x1c9   :  { %v1645_v61 = vpop.f32.mrb[5].mxu0  ;;  %4795 = vmatpush3.bf16.msra.mxu1 %v4792_v26  ;;  %v4824_v26 = vpack.c.bf16 %v2315_v3, %v2308_v2  ;;  %v2739_v33 = vsel %vm595_vm1, %v5402_v60, 0 }
 0x1ca   :  { %4797 = vmatprep.subr.bf16.mxu1 %v5357_v62  ;;  %v2736_v31 = vsel %vm595_vm1, %v1645_v61, 0  ;;  %v5455_v45 = vand.u32 4294901760, %v2739_v33 }
 0x1cb   :  { %v5440_v24 = vand.u32 4294901760, %v2736_v31 }
 0x1cc   :  { %4401 = vmatmul.mubr.f32.vlgmr.msra.gmra.mrb[2].mxu1 %v5372_v38  ;;  %v2821_v52 = vsub.f32 %v2739_v33, %v5455_v45 }
 0x1cd   :  { %4799 = vmatpush3.bf16.msra.mxu1 %v5357_v62  ;;  %4411 = vmatprep.mubr.f32.mxu1 %v1738_v40  ;;  %v2284_v62 = vand.u32 4294901760, %v2283_v8  ;;  %v2748_v40 = vand.u32 4294901760, %v2733_v37  ;;  %v2811_v43 = vsub.f32 %v2736_v31, %v5440_v24 }
 0x1ce   :  { %4801 = vmatprep.subr.bf16.mxu1 %v5367_v7  ;;  %v2822_v58 = vand.u32 4294901760, %v2821_v52 }
 0x1cf   :  { %v2285_v19 = vsub.f32 %v2283_v8, %v2284_v62  ;;  %v2846_v47 = vsub.f32 %v2733_v37, %v2748_v40  ;;  %v2812_v48 = vand.u32 4294901760, %v2811_v43 }
 0x1d0   :  { %v2823_v63 = vsub.f32 %v2821_v52, %v2822_v58 }
 0x1d1   :  { %4803 = vmatpush3.bf16.msra.mxu1 %v5367_v7  ;;  %v2311_v7 = vand.u32 4294901760, %v2310_v16  ;;  %v2286_v22 = vand.u32 4294901760, %v2285_v19  ;;  %v2847_v54 = vand.u32 4294901760, %v2846_v47  ;;  %v2813_v51 = vsub.f32 %v2811_v43, %v2812_v48  ;;  %v3286_v19 = vld [vmem:[%s5557_s8 + $0x20] sm:$0xff] }
 0x1d2   :  { %4805 = vmatprep.subr.bf16.mxu1 %v5411_v5 }
 0x1d3   :  { %v4816_v23 = vpack.c.bf16 %v2318_v21, %v2311_v7  ;;  %v2848_v60 = vsub.f32 %v2846_v47, %v2847_v54  ;;  %v2814_v61 = vand.u32 4294901760, %v2813_v51  ;;  %v3317_v7 = vand.u32 4294901760, %v3286_v19 }
 0x1d4   :  { %4412 = vmatmul.mubr.f32.vlgmr.msra.gmra.mrb[2].mxu1 %v5372_v38  ;;  %v2734_v38 = vld [vmem:[%s5555_s6 + $0x58] sm:$0xff] }
 0x1d5   :  { %4807 = vmatpush3.bf16.msra.mxu1 %v5411_v5  ;;  %4422 = vmatprep.mubr.f32.mxu1 %v2276_v18  ;;  %v2751_v41 = vand.u32 4294901760, %v2734_v38  ;;  %v2849_v2 = vand.u32 4294901760, %v2848_v60 }
 0x1d6   :  { %4809 = vmatprep.subr.bf16.mxu1 %v5418_v13 }
 0x1d7   :  { %v2853_v29 = vsub.f32 %v2734_v38, %v2751_v41  ;;  %v4856_v57 = vpack.c.bf16 %v2751_v41, %v2748_v40  ;;  %v3420_v38 = vsub.f32 %v3285_v15, %v3314_v17 }
 0x1d9   :  { %4811 = vmatpush3.bf16.msra.mxu1 %v5418_v13  ;;  %v2854_v55 = vand.u32 4294901760, %v2853_v29  ;;  %v3421_v42 = vand.u32 4294901760, %v3420_v38 }
 0x1da   :  { %4813 = vmatprep.subr.bf16.mxu1 %v4812_v20 }
 0x1db   :  { %v4888_v9 = vpack.c.bf16 %v2854_v55, %v2847_v54 }
 0x1dc   :  { %4423 = vmatmul.mubr.f32.vlgmr.msra.gmra.mrb[2].mxu1 %v2286_v22 }
 0x1dd   :  { %4815 = vmatpush3.bf16.msra.mxu1 %v4812_v20  ;;  %4433 = vmatprep.mubr.f32.mxu1 %v5388_v32  ;;  %v3287_v20 = vld [vmem:[%s5557_s8 + $0x28] sm:$0xff] }
 0x1de   :  { %4817 = vmatprep.subr.bf16.mxu1 %v4816_v23  ;;  %v3320_v21 = vand.u32 4294901760, %v3287_v20 }
 0x1e0   :  { %v5499_v22 = vpack.c.bf16 %v3320_v21, %v3317_v7 }
 0x1e1   :  { %4819 = vmatpush3.bf16.msra.mxu1 %v4816_v23  ;;  %v3399_v23 = vsub.f32 %v3282_v10, %v3305_v12  ;;  %v3926_v10 = vld [vmem:[%s5556_s7] ss:$0 sm:$0xff] }
 0x1e2   :  { %4821 = vmatprep.subr.bf16.mxu1 %v4820_v25 }
 0x1e3   :  { %v3400_v31 = vand.u32 4294901760, %v3399_v23 }
 0x1e4   :  { %4434 = vmatmul.mubr.f32.vlgmr.msra.gmra.mrb[2].mxu1 %v5405_v0 }
 0x1e5   :  { %4823 = vmatpush3.bf16.msra.mxu1 %v4820_v25  ;;  %4444 = vmatprep.mubr.f32.mxu1 %v2273_v59  ;;  %v2842_v59 = vand.u32 4294901760, %v2841_v53  ;;  %v3401_v36 = vsub.f32 %v3399_v23, %v3400_v31 }
 0x1e6   :  { %4825 = vmatprep.subr.bf16.mxu1 %v4824_v26 }
 0x1e7   :  { %v4860_v1 = vpack.c.bf16 %v2842_v59, %v2835_v56  ;;  %v3402_v39 = vand.u32 4294901760, %v3401_v36 }
 0x1e9   :  { %4827 = vmatpush3.bf16.msra.mxu1 %v4824_v26  ;;  %v3288_v26 = vld [vmem:[%s5557_s8 + $0x30] sm:$0xff] }
 0x1ea   :  { %4829 = vmatprep.subr.bf16.mxu1 %v5411_v5  ;;  %v3323_v28 = vand.u32 4294901760, %v3288_v26 }
 0x1ec   :  { %4445 = vmatmul.mubr.f32.vlgmr.msra.gmra.mrb[2].mxu1 %v2283_v8  ;;  %v4884_v8 = vpack.c.bf16 %v2840_v46, %v2833_v44  ;;  %v3422_v44 = vsub.f32 %v3420_v38, %v3421_v42  ;;  %v3434_v46 = vsub.f32 %v3287_v20, %v3320_v21  ;;  %v3441_v54 = vsub.f32 %v3288_v26, %v3323_v28 }
 0x1ed   :  { %4831 = vmatpush3.bf16.msra.mxu1 %v5411_v5  ;;  %4455 = vmatprep.mubr.f32.mxu1 %v2274_v4  ;;  %v2824_v4 = vand.u32 4294901760, %v2823_v63 }
 0x1ee   :  { %4833 = vmatprep.subr.bf16.mxu1 %v5418_v13  ;;  %v3442_v56 = vand.u32 4294901760, %v3441_v54 }
 0x1f0   :  { %v3443_v60 = vsub.f32 %v3441_v54, %v3442_v56 }
 0x1f1   :  { %4835 = vmatpush3.bf16.msra.mxu1 %v5418_v13 }
 0x1f2   :  { %4837 = vmatprep.subr.bf16.mxu1 %v4836_v27 }
 0x1f4   :  { %4456 = vmatmul.mubr.f32.vlgmr.msra.gmra.mrb[2].mxu1 %v2284_v62  ;;  %v3284_v62 = vld [vmem:[%s5557_s8 + $0x10] sm:$0xff] }
 0x1f5   :  { %4839 = vmatpush3.bf16.msra.mxu1 %v4836_v27  ;;  %4466 = vmatprep.mubr.f32.mxu1 %v5388_v32  ;;  %v3311_v16 = vand.u32 4294901760, %v3284_v62  ;;  %v3289_v27 = vld [vmem:[%s5557_s8 + $0x38] sm:$0xff] }
 0x1f6   :  { %4841 = vmatprep.subr.bf16.mxu1 %v4840_v35  ;;  %v3326_v30 = vand.u32 4294901760, %v3289_v27 }
 0x1f7   :  { %v5489_v18 = vpack.c.bf16 %v3314_v17, %v3311_v16  ;;  %v3413_v37 = vsub.f32 %v3284_v62, %v3311_v16 }
 0x1f9   :  { %4843 = vmatpush3.bf16.msra.mxu1 %v4840_v35  ;;  %v5509_v35 = vpack.c.bf16 %v3326_v30, %v3323_v28  ;;  %v3414_v41 = vand.u32 4294901760, %v3413_v37 }
 0x1fa   :  { %4845 = vmatprep.subr.bf16.mxu1 %v5411_v5 }
 0x1fc   :  { %4467 = vmatmul.mubr.f32.vlgmr.msra.gmra.mrb[2].mxu1 %v5405_v0 }
 0x1fd   :  { %4847 = vmatpush3.bf16.msra.mxu1 %v5411_v5  ;;  %4477 = vmatprep.mubr.f32.mxu1 %v5388_v32  ;;  %v2855_v32 = vsub.f32 %v2853_v29, %v2854_v55  ;;  %v3448_v55 = vsub.f32 %v3289_v27, %v3326_v30 }
 0x1fe   :  { %4849 = vmatprep.subr.bf16.mxu1 %v5418_v13 }
 0x1ff   :  { %v2856_v3 = vand.u32 4294901760, %v2855_v32 }
 0x201   :  { %4851 = vmatpush3.bf16.msra.mxu1 %v5418_v13  ;;  %v4864_v5 = vpack.c.bf16 %v2856_v3, %v2849_v2  ;;  %v3308_v13 = vand.u32 4294901760, %v3283_v11  ;;  %v4936_v3 = vpack.c.bf16 %v3420_v38, %v3413_v37 }
 0x202   :  { %4853 = vmatprep.subr.bf16.mxu1 %v4852_v49 }
 0x203   :  { %v5479_v14 = vpack.c.bf16 %v3308_v13, %v3305_v12  ;;  %v3406_v25 = vsub.f32 %v3283_v11, %v3308_v13 }
 0x204   :  { %4478 = vmatmul.mubr.f32.vlgmr.msra.gmra.mrb[2].mxu1 %v5405_v0  ;;  %v4872_v0 = vpack.c.bf16 %v2853_v29, %v2846_v47  ;;  %v3423_v29 = vand.u32 4294901760, %v3422_v44 }
 0x205   :  { %4855 = vmatpush3.bf16.msra.mxu1 %v4852_v49  ;;  %4488 = vmatprep.mubr.f32.mxu1 %v2814_v61  ;;  %v3407_v34 = vand.u32 4294901760, %v3406_v25  ;;  %v3444_v61 = vand.u32 4294901760, %v3443_v60  ;;  %v4932_v2 = vpack.c.bf16 %v3406_v25, %v3399_v23 }
 0x206   :  { %4857 = vmatprep.subr.bf16.mxu1 %v4856_v57  ;;  %4901 = vmatprep.subr.bf16.mxu0 %v5479_v14 }
 0x207   :  { %4903 = vmatpush3.bf16.msra.mxu0 %v5479_v14 }
 0x208   :  { %4905 = vmatprep.subr.bf16.mxu0 %v5489_v18 }
 0x209   :  { %4859 = vmatpush3.bf16.msra.mxu1 %v4856_v57 }
 0x20a   :  { %4861 = vmatprep.subr.bf16.mxu1 %v4860_v1 }
 0x20b   :  { %4907 = vmatpush3.bf16.msra.mxu0 %v5489_v18 }
 0x20c   :  { %4489 = vmatmul.mubr.f32.vlgmr.msra.gmra.mrb[2].mxu1 %v2824_v4  ;;  %4909 = vmatprep.subr.bf16.mxu0 %v5499_v22 }
 0x20d   :  { %4863 = vmatpush3.bf16.msra.mxu1 %v4860_v1  ;;  %4499 = vmatprep.mubr.f32.mxu1 %v5440_v24 }
 0x20e   :  { %4865 = vmatprep.subr.bf16.mxu1 %v4864_v5 }
 0x20f   :  { %4911 = vmatpush3.bf16.msra.mxu0 %v5499_v22 }
 0x210   :  { %4913 = vmatprep.subr.bf16.mxu0 %v5509_v35 }
 0x211   :  { %4867 = vmatpush3.bf16.msra.mxu1 %v4864_v5  ;;  %v4944_v5 = vpack.c.bf16 %v3448_v55, %v3441_v54 }
 0x212   :  { %4869 = vmatprep.subr.bf16.mxu1 %v4868_v6 }
 0x213   :  { %4915 = vmatpush3.bf16.msra.mxu0 %v5509_v35 }
 0x214   :  { %4500 = vmatmul.mubr.f32.vlgmr.msra.gmra.mrb[2].mxu1 %v5455_v45 }
 0x215   :  { %4871 = vmatpush3.bf16.msra.mxu1 %v4868_v6  ;;  %4510 = vmatprep.mubr.f32.mxu1 %v2811_v43  ;;  %v3415_v43 = vsub.f32 %v3413_v37, %v3414_v41  ;;  %v4964_v6 = vpack.c.bf16 %v3407_v34, %v3400_v31 }
 0x216   :  { %4873 = vmatprep.subr.bf16.mxu1 %v4872_v0 }
 0x217   :  { %v3416_v47 = vand.u32 4294901760, %v3415_v43 }
 0x219   :  { %4875 = vmatpush3.bf16.msra.mxu1 %v4872_v0  ;;  %v4920_v50 = vpack.c.bf16 %v3423_v29, %v3416_v47  ;;  %v4968_v0 = vpack.c.bf16 %v3421_v42, %v3414_v41 }
 0x21a   :  { %4877 = vmatprep.subr.bf16.mxu1 %v4852_v49 }
 0x21c   :  { %4511 = vmatmul.mubr.f32.vlgmr.msra.gmra.mrb[2].mxu1 %v2821_v52 }
 0x21d   :  { %4879 = vmatpush3.bf16.msra.mxu1 %v4852_v49  ;;  %4521 = vmatprep.mubr.f32.mxu1 %v2812_v48 }
 0x21e   :  { %4881 = vmatprep.subr.bf16.mxu1 %v4856_v57 }
 0x221   :  { %4883 = vmatpush3.bf16.msra.mxu1 %v4856_v57 }
 0x222   :  { %4885 = vmatprep.subr.bf16.mxu1 %v4884_v8 }
 0x224   :  { %4522 = vmatmul.mubr.f32.vlgmr.msra.gmra.mrb[2].mxu1 %v2822_v58  ;;  %v3449_v58 = vand.u32 4294901760, %v3448_v55 }
 0x225   :  { %4887 = vmatpush3.bf16.msra.mxu1 %v4884_v8  ;;  %4532 = vmatprep.mubr.f32.mxu1 %v5440_v24 }
 0x226   :  { %4889 = vmatprep.subr.bf16.mxu1 %v4888_v9  ;;  %v3450_v32 = vsub.f32 %v3448_v55, %v3449_v58 }
 0x228   :  { %v3451_v63 = vand.u32 4294901760, %v3450_v32 }
 0x229   :  { %4891 = vmatpush3.bf16.msra.mxu1 %v4888_v9  ;;  %v4976_v9 = vpack.c.bf16 %v3449_v58, %v3442_v56 }
 0x22a   :  { %4893 = vmatprep.subr.bf16.mxu1 %v4852_v49  ;;  %v4928_v1 = vpack.c.bf16 %v3451_v63, %v3444_v61 }
 0x22c   :  { %4533 = vmatmul.mubr.f32.vlgmr.msra.gmra.mrb[2].mxu1 %v5455_v45 }
 0x22d   :  { %4895 = vmatpush3.bf16.msra.mxu1 %v4852_v49  ;;  %4543 = vmatprep.mubr.f32.mxu1 %v5440_v24  ;;  %v3408_v24 = vsub.f32 %v3406_v25, %v3407_v34  ;;  %v3435_v49 = vand.u32 4294901760, %v3434_v46  ;;  %v3927_v34 = vld [vmem:[%s5558_s9] ss:$0 sm:$0xff] }
 0x22e   :  { %4897 = vmatprep.subr.bf16.mxu1 %v4856_v57 }
 0x22f   :  { %v3409_v40 = vand.u32 4294901760, %v3408_v24  ;;  %v3436_v53 = vsub.f32 %v3434_v46, %v3435_v49 }
 0x231   :  { %4899 = vmatpush3.bf16.msra.mxu1 %v4856_v57  ;;  %v4916_v33 = vpack.c.bf16 %v3409_v40, %v3402_v39  ;;  %v3437_v57 = vand.u32 4294901760, %v3436_v53 }
 0x233   :  { %4917 = vmatprep.subr.bf16.mxu0 %v4916_v33 }
 0x234   :  { %4544 = vmatmul.mubr.f32.vlgmr.msra.gmra.mrb[2].mxu1 %v5455_v45  ;;  %v3427_v45 = vsub.f32 %v3286_v19, %v3317_v7 }
 0x236   :  { %v3428_v48 = vand.u32 4294901760, %v3427_v45  ;;  %v4940_v4 = vpack.c.bf16 %v3434_v46, %v3427_v45 }
 0x238   :  { %v3429_v52 = vsub.f32 %v3427_v45, %v3428_v48  ;;  %v4972_v8 = vpack.c.bf16 %v3435_v49, %v3428_v48 }
 0x23a   :  { %v3430_v51 = vand.u32 4294901760, %v3429_v52 }
 0x23c   :  { %v4924_v59 = vpack.c.bf16 %v3437_v57, %v3430_v51 }
 0x307   :  { %v4545_v11 = vpop.f32.mrb[2].mxu1 }
 0x308   :  { %v3279_v12 = vadd.f32 %v4545_v11, %v3926_v10  ;;  %v3259_v13 = vpop.f32.mrb[3].mxu1 }
 0x309   :  { %v3278_v62 = vadd.f32 %v3926_v10, %v3259_v13 }
 0x30a   :  { %v3281_v15 = vmax.f32 %v3279_v12, 0.0 }
 0x30b   :  { %v3280_v16 = vmax.f32 %v3278_v62, 0.0 }
 0x30c   :  { %v3302_v17 = vsel %vm3297_vm9, %v3281_v15, 0 }
 0x30d   :  { %v3387_v19 = vand.u32 4294901760, %v3302_v17  ;;  %v3299_v20 = vsel %vm3297_vm9, %v3280_v16, 0 }
 0x30e   :  { %v3377_v7 = vand.u32 4294901760, %v3299_v20 }
 0x30f   :  { %v3388_v21 = vsub.f32 %v3302_v17, %v3387_v19 }
 0x310   :  { %v3378_v23 = vsub.f32 %v3299_v20, %v3377_v7 }
 0x311   :  { %v3389_v25 = vand.u32 4294901760, %v3388_v21 }
 0x312   :  { %v3379_v26 = vand.u32 4294901760, %v3378_v23 }
 0x313   :  { %v3390_v27 = vsub.f32 %v3388_v21, %v3389_v25 }
 0x314   :  { %v3380_v28 = vsub.f32 %v3378_v23, %v3379_v26 }
 0x315   :  { %v3391_v31 = vand.u32 4294901760, %v3390_v27 }
 0x316   :  { %v3381_v30 = vand.u32 4294901760, %v3380_v28 }
 0x318   :  { %4562 = vmatprep.mubr.f32.mxu0 %v3381_v30 }
 0x319   :  { %4563 = vmatmul.mubr.f32.vlgmr.msra.gmra.mrb[6].mxu0 %v3391_v31 }
 0x31a   :  { %4919 = vmatpush3.bf16.msra.mxu0 %v4916_v33  ;;  %4581 = vmatprep.mubr.f32.mxu0 %v3377_v7 }
 0x31b   :  { %4921 = vmatprep.subr.bf16.mxu0 %v4920_v50 }
 0x31e   :  { %4923 = vmatpush3.bf16.msra.mxu0 %v4920_v50 }
 0x31f   :  { %4925 = vmatprep.subr.bf16.mxu0 %v4924_v59 }
 0x322   :  { %4927 = vmatpush3.bf16.msra.mxu0 %v4924_v59 }
 0x323   :  { %4929 = vmatprep.subr.bf16.mxu0 %v4928_v1 }
 0x326   :  { %4931 = vmatpush3.bf16.msra.mxu0 %v4928_v1 }
 0x327   :  { %4933 = vmatprep.subr.bf16.mxu0 %v4932_v2 }
 0x329   :  { %4582 = vmatmul.mubr.f32.vlgmr.msra.gmra.mrb[6].mxu0 %v3387_v19 }
 0x32a   :  { %4935 = vmatpush3.bf16.msra.mxu0 %v4932_v2  ;;  %4600 = vmatprep.mubr.f32.mxu0 %v3378_v23 }
 0x32b   :  { %4937 = vmatprep.subr.bf16.mxu0 %v4936_v3 }
 0x32e   :  { %4939 = vmatpush3.bf16.msra.mxu0 %v4936_v3 }
 0x32f   :  { %4941 = vmatprep.subr.bf16.mxu0 %v4940_v4 }
 0x332   :  { %4943 = vmatpush3.bf16.msra.mxu0 %v4940_v4 }
 0x333   :  { %4945 = vmatprep.subr.bf16.mxu0 %v4944_v5 }
 0x336   :  { %4947 = vmatpush3.bf16.msra.mxu0 %v4944_v5 }
 0x337   :  { %4949 = vmatprep.subr.bf16.mxu0 %v5479_v14 }
 0x339   :  { %4601 = vmatmul.mubr.f32.vlgmr.msra.gmra.mrb[6].mxu0 %v3388_v21 }
 0x33a   :  { %4951 = vmatpush3.bf16.msra.mxu0 %v5479_v14  ;;  %4619 = vmatprep.mubr.f32.mxu0 %v3379_v26 }
 0x33b   :  { %4953 = vmatprep.subr.bf16.mxu0 %v5489_v18 }
 0x33e   :  { %4955 = vmatpush3.bf16.msra.mxu0 %v5489_v18 }
 0x33f   :  { %4957 = vmatprep.subr.bf16.mxu0 %v5499_v22 }
 0x342   :  { %4959 = vmatpush3.bf16.msra.mxu0 %v5499_v22 }
 0x343   :  { %4961 = vmatprep.subr.bf16.mxu0 %v5509_v35 }
 0x346   :  { %4963 = vmatpush3.bf16.msra.mxu0 %v5509_v35 }
 0x347   :  { %4965 = vmatprep.subr.bf16.mxu0 %v4964_v6 }
 0x349   :  { %4620 = vmatmul.mubr.f32.vlgmr.msra.gmra.mrb[6].mxu0 %v3389_v25 }
 0x34a   :  { %4967 = vmatpush3.bf16.msra.mxu0 %v4964_v6  ;;  %4638 = vmatprep.mubr.f32.mxu0 %v3377_v7 }
 0x34b   :  { %4969 = vmatprep.subr.bf16.mxu0 %v4968_v0 }
 0x34e   :  { %4971 = vmatpush3.bf16.msra.mxu0 %v4968_v0 }
 0x34f   :  { %4973 = vmatprep.subr.bf16.mxu0 %v4972_v8 }
 0x352   :  { %4975 = vmatpush3.bf16.msra.mxu0 %v4972_v8 }
 0x353   :  { %4977 = vmatprep.subr.bf16.mxu0 %v4976_v9 }
 0x356   :  { %4979 = vmatpush3.bf16.msra.mxu0 %v4976_v9 }
 0x357   :  { %4981 = vmatprep.subr.bf16.mxu0 %v5479_v14 }
 0x359   :  { %4639 = vmatmul.mubr.f32.vlgmr.msra.gmra.mrb[6].mxu0 %v3387_v19 }
 0x35a   :  { %4983 = vmatpush3.bf16.msra.mxu0 %v5479_v14  ;;  %4657 = vmatprep.mubr.f32.mxu0 %v3377_v7 }
 0x35b   :  { %4985 = vmatprep.subr.bf16.mxu0 %v5489_v18 }
 0x35e   :  { %4987 = vmatpush3.bf16.msra.mxu0 %v5489_v18 }
 0x35f   :  { %4989 = vmatprep.subr.bf16.mxu0 %v5499_v22 }
 0x362   :  { %4991 = vmatpush3.bf16.msra.mxu0 %v5499_v22 }
 0x363   :  { %4993 = vmatprep.subr.bf16.mxu0 %v5509_v35 }
 0x366   :  { %4995 = vmatpush3.bf16.msra.mxu0 %v5509_v35 }
 0x369   :  { %4658 = vmatmul.mubr.f32.vlgmr.msra.gmra.mrb[6].mxu0 %v3387_v19 }
 0x43c   :  { %v4659_v14 = vpop.f32.mrb[6].mxu0 }
 0x43d   :  { %v4998_v36 = vadd.f32 %v4659_v14, %v3927_v34  ;;  %v3874_v24 = vpop.f32.mrb[7].mxu0 }
 0x43e   :  { %v4999_v18 = vadd.f32 %v3927_v34, %v3874_v24 }
 0x43f   :  { %3885 = vst.msk [vmem:[#allocation2 + $0x8] sm:$0xff] %vm595_vm1, %v4998_v36 }
 0x440   :  { %3884 = vst.msk [vmem:[#allocation2] sm:$0xff] %vm595_vm1, %v4999_v18 }
 0x441   :  { %5090 = shalt.err (!%p5087_p4)
}
 0x442   :  { %s5091_s14 = scalar_lea.hbm %s5559_s10, 256 }
 0x443   :  { %p5092_p5 = scmp.ne.s32.totalorder %s5559_s10, %s5091_s14  ;;  %p5095_p6 = scmp.lt.u32.totalorder %s5091_s14, %s5559_s10 }
 0x445   :  { %p5097_p7 = pnand %p5095_p6, %p5092_p5 }
 0x447   :  { %5100 = shalt.err (!%p5097_p7)
}
 0x448   :  { %s5106_s6 = smov 128   ;;  %s5107_s16 = smov 8  }
 0x449   :  { %3897 = dma.vmem_to_hbm [thread:$0]  %s3892_s11, 256, %s5559_s10, [#allocation3], %s5106_s6, %s5106_s6, %s5107_s16  }
 0x44a   :  { %5101 = dma.done.wait [#allocation3], 256  }
 0x44b   :  { %5102 = vsyncadd [#allocation3], 4294967040 }
 0x44c   :  { %3901 = vsyncpa [#allocation3], 1 }

</bundles_post_ra>
